<compile_context>
chip_gen: v5e
topology: v5e:2x2
jax: 0.10.0
libtpu: 0.0.40
codegen_flags: <defaults>
</compile_context>

<pallas_src>
import jax
import jax.numpy as jnp
from jax import lax
from jax.experimental import pallas as pl
from jax.experimental.pallas import tpu as pltpu


def _round_up(v: int, m: int) -> int:
    return (v + m - 1) // m * m


def _pick_batch_tile(n: int, block_batch: int):
    """Choose a lane-aligned batch tile `tb` and padded batch size `n_pad`.

    Preferences: (a) no padding copy when avoidable, (b) large tiles (few grid
    steps -> amortize ~0.35 us/step pipeline overhead), (c) >=2 grid steps when
    cheap so v7x's second TensorCore gets work.
    """
    if n <= block_batch:
        if n >= 256 and n % 256 == 0:
            return n // 2, n          # two lane-aligned tiles -> megacore-friendly
        return n, n                   # one full-extent block (always legal)
    # Large batch: lane-align, then pick the largest multiple-of-128 tile that
    # divides the padded batch (fewest steps, no per-step remainder handling).
    n_pad = _round_up(n, 128)
    cap = (min(block_batch, n_pad // 2) // 128) * 128
    tb = 128
    cand = cap
    while cand >= 128:
        if n_pad % cand == 0:
            tb = cand
            break
        cand -= 128
    return tb, n_pad


def mlp_kernel(xt_ref, w1_ref, b1_ref, w2_ref, b2_ref, ot_ref):
    """One batch tile, batch-on-lanes layout.

    xt:(F,tb)  w1:(H,F)  b1:(H,1)  w2:(OUT,H)  b2:(OUT,1)  ot:(OUT,tb)
    """
    f_dim = xt_ref.shape[0]
    if f_dim <= 4:
        # Degenerate contraction (F tiny): F broadcast-FMAs on the VPU instead
        # of a K=F MXU matmul.  (H,1)*(1,tb) broadcasts -> (H,tb), f32 accum.
        xt = xt_ref[...].astype(jnp.float32)
        w1 = w1_ref[...].astype(jnp.float32)
        h = b1_ref[...] + w1[:, 0:1] * xt[0:1, :]
        for fi in range(1, f_dim):
            h = h + w1[:, fi:fi + 1] * xt[fi:fi + 1, :]
    else:
        h = lax.dot_general(
            w1_ref[...], xt_ref[...],
            dimension_numbers=(((1,), (0,)), ((), ())),
            preferred_element_type=jnp.float32,
        ) + b1_ref[...]
    h = jnp.maximum(h, 0.0)                                   # relu, f32

    # o_T = W2 @ h  — K = H (128-multiple) contraction, MXU-friendly.
    o = lax.dot_general(
        w2_ref[...], h.astype(w2_ref.dtype),
        dimension_numbers=(((1,), (0,)), ((), ())),
        preferred_element_type=jnp.float32,
    )
    ot_ref[...] = (o + b2_ref[...]).astype(ot_ref.dtype)


def net_forward(x, w1, b1, w2, b2, *, block_batch=8192, use_bf16=False):
    """Exact equivalent of Net.forward: relu(x @ w1.T + b1) @ w2.T + b2.

    w1: (H, F), b1: (H,), w2: (OUT, H), b2: (OUT,)  — torch.nn.Linear layout.
    Set use_bf16=True on v6e/v7x to stream x/weights in bf16 (f32 accumulation,
    f32 biases, output keeps x.dtype).
    """
    n, f = x.shape
    h = w1.shape[0]
    n_out = w2.shape[0]
    out_dtype = x.dtype

    # --- pad the (purely internal) hidden dim to a multiple of 128 lanes -----
    h_pad = _round_up(h, 128)
    if h_pad != h:
        w1 = jnp.zeros((h_pad, f), w1.dtype).at[:h, :].set(w1)
        b1 = jnp.zeros((h_pad,), b1.dtype).at[:h].set(b1)
        w2 = jnp.zeros((n_out, h_pad), w2.dtype).at[:, :h].set(w2)

    # --- batch-on-lanes layout: one wrapper-side transpose of the activations
    compute_dtype = jnp.bfloat16 if use_bf16 else x.dtype
    x_t = jnp.transpose(x).astype(compute_dtype)          # (F, N)
    w1_c = w1.astype(compute_dtype)                        # (H_pad, F)   native torch layout
    w2_c = w2.astype(compute_dtype)                        # (OUT, H_pad) native torch layout
    b1_c = b1.reshape(h_pad, 1).astype(jnp.float32)        # f32 biases, added post-accumulation
    b2_c = b2.reshape(n_out, 1).astype(jnp.float32)

    # --- batch tiling ---------------------------------------------------------
    tb, n_pad = _pick_batch_tile(n, block_batch)
    if n_pad != n:
        # Only hit when n > block_batch and n % 128 != 0 (adds <=127 zero cols).
        x_t = jnp.zeros((f, n_pad), x_t.dtype).at[:, :n].set(x_t)
    grid = (n_pad // tb,)

    resident = lambda i: (0, 0)        # weights/biases: DMA'd once, stay in VMEM

    # --- VMEM budget & cost estimate (explicit, with headroom; never all 64MiB)
    itemsize = jnp.dtype(compute_dtype).itemsize
    out_itemsize = jnp.dtype(out_dtype).itemsize
    weight_bytes = (h_pad * f + h_pad * n_out) * itemsize + (h_pad + n_out) * 4
    stream_tile_bytes = 2 * tb * (f * itemsize + n_out * out_itemsize)   # double-buffered
    hidden_tmp_bytes = 3 * h_pad * tb * 4                                # f32 hidden temporaries
    vmem_need = stream_tile_bytes + 2 * weight_bytes + hidden_tmp_bytes
    vmem_limit = int(min(32 << 20, max(8 << 20, vmem_need + (4 << 20))))

    cost = pl.CostEstimate(
        flops=2 * n_pad * h_pad * (f + n_out),
        transcendentals=0,
        bytes_accessed=n_pad * f * itemsize + n_pad * n_out * out_itemsize + weight_bytes,
    )

    out_t = pl.pallas_call(
        mlp_kernel,
        out_shape=jax.ShapeDtypeStruct((n_out, n_pad), out_dtype),
        grid=grid,
        in_specs=[
            pl.BlockSpec((f, tb), lambda i: (0, i)),        # x_T tile (double-buffered stream)
            pl.BlockSpec((h_pad, f), resident),             # W1
            pl.BlockSpec((h_pad, 1), resident),             # b1
            pl.BlockSpec((n_out, h_pad), resident),         # W2
            pl.BlockSpec((n_out, 1), resident),             # b2
        ],
        out_specs=pl.BlockSpec((n_out, tb), lambda i: (0, i)),
        compiler_params=pltpu.CompilerParams(
            dimension_semantics=("parallel",),              # megacore split on v7x
            vmem_limit_bytes=vmem_limit,
        ),
        cost_estimate=cost,
    )(x_t, w1_c, b1_c, w2_c, b2_c)

    out_t = out_t[:, :n] if n_pad != n else out_t
    return jnp.transpose(out_t)                             # (N, OUT)


def init_linear_params(key, in_features, out_features):
    # Deterministic init mimicking torch.nn.Linear default:
    # U(-1/sqrt(fan_in), 1/sqrt(fan_in)) for both weight and bias.
    kw, kb = jax.random.split(key)
    bound = 1.0 / jnp.sqrt(jnp.float32(in_features))
    w = jax.random.uniform(kw, (out_features, in_features), jnp.float32,
                           minval=-bound, maxval=bound)
    b = jax.random.uniform(kb, (out_features,), jnp.float32,
                           minval=-bound, maxval=bound)
    return w, b


def _reference(x, w1, b1, w2, b2):
    return jnp.maximum(x @ w1.T + b1, 0.0) @ w2.T + b2


if __name__ == "__main__":
    # Shapes implied by the classification example: Net(n_feature=2, n_hidden, n_output=2)
    n_feature, n_hidden, n_output = 2, 32, 2
    batch = 8

    key = jax.random.PRNGKey(0)
    kx0, kx1, k1, k2, kbig = jax.random.split(key, 5)

    # Synthetic two-cluster data like the torch script (centers at +2 and -2).
    half = batch // 2
    x0 = 2.0 + jax.random.normal(kx0, (half, n_feature), jnp.float32)
    x1 = -2.0 + jax.random.normal(kx1, (half, n_feature), jnp.float32)
    x = jnp.concatenate([x0, x1], axis=0)

    w1, b1 = init_linear_params(k1, n_feature, n_hidden)
    w2, b2 = init_linear_params(k2, n_hidden, n_output)

    # 1) Tiny batch (single full-extent block), matches the torch example shape.
    out = net_forward(x, w1, b1, w2, b2)
    jax.block_until_ready(out)
    ref = _reference(x, w1, b1, w2, b2)
    assert out.shape == (batch, n_output)
    assert out.dtype == x.dtype
    assert jnp.allclose(out, ref, atol=1e-5), "mismatch vs reference (tiny batch)"

    # 2) Lane-aligned batch -> exercises the 2-step (megacore-friendly) path.
    xb = jax.random.normal(kbig, (512, n_feature), jnp.float32)
    outb = net_forward(xb, w1, b1, w2, b2)
    jax.block_until_ready(outb)
    assert jnp.allclose(outb, _reference(xb, w1, b1, w2, b2), atol=1e-5), \
        "mismatch vs reference (multi-tile batch)"

    # 3) Non-multiple-of-128 batch with a small forced tile -> exercises the
    #    pad-and-slice tail path of the tiler.
    xr = jax.random.normal(kbig, (300, n_feature), jnp.float32)
    outr = net_forward(xr, w1, b1, w2, b2, block_batch=128)
    jax.block_until_ready(outr)
    assert outr.shape == (300, n_output)
    assert jnp.allclose(outr, _reference(xr, w1, b1, w2, b2), atol=1e-5), \
        "mismatch vs reference (padded batch)"

    print("KERNEL_OK")
</pallas_src>

<mosaic_0001>
module attributes {stable_mosaic.version = 11 : i64} {
  func.func @mlp_kernel(%arg0: i32, %arg1: memref<2x8xf32, #tpu.memory_space<vmem>>, %arg2: memref<128x2xf32, #tpu.memory_space<vmem>>, %arg3: memref<128x1xf32, #tpu.memory_space<vmem>>, %arg4: memref<2x128xf32, #tpu.memory_space<vmem>>, %arg5: memref<2x1xf32, #tpu.memory_space<vmem>>, %arg6: memref<2x8xf32, #tpu.memory_space<vmem>>) attributes {dimension_semantics = [#tpu.dimension_semantics<parallel>], iteration_bounds = array<i64: 1>, scalar_prefetch = 0 : i64, scratch_operands = 0 : i64, tpu.core_type = #tpu.core_type<tc>, window_params = [{transform_indices = @transform_0, window_bounds = array<i64: 2, 8>}, {pipeline_mode = #tpu.pipeline_mode<synchronous>, transform_indices = @transform_1, window_bounds = array<i64: 128, 2>}, {pipeline_mode = #tpu.pipeline_mode<synchronous>, transform_indices = @transform_2, window_bounds = array<i64: 128, 1>}, {pipeline_mode = #tpu.pipeline_mode<synchronous>, transform_indices = @transform_3, window_bounds = array<i64: 2, 128>}, {pipeline_mode = #tpu.pipeline_mode<synchronous>, transform_indices = @transform_4, window_bounds = array<i64: 2, 1>}, {transform_indices = @transform_5, window_bounds = array<i64: 2, 8>}]} {
    %c0 = arith.constant 0 : index
    %c0_0 = arith.constant 0 : index
    %0 = vector.load %arg1[%c0, %c0_0] : memref<2x8xf32, #tpu.memory_space<vmem>>, vector<2x8xf32>
    %c0_1 = arith.constant 0 : index
    %c0_2 = arith.constant 0 : index
    %1 = vector.load %arg2[%c0_1, %c0_2] : memref<128x2xf32, #tpu.memory_space<vmem>>, vector<128x2xf32>
    %c0_3 = arith.constant 0 : index
    %c0_4 = arith.constant 0 : index
    %2 = vector.load %arg3[%c0_3, %c0_4] : memref<128x1xf32, #tpu.memory_space<vmem>>, vector<128x1xf32>
    %3 = vector.extract_strided_slice %1 {offsets = [0, 0], sizes = [128, 1], strides = [1, 1]} : vector<128x2xf32> to vector<128x1xf32>
    %4 = vector.extract_strided_slice %0 {offsets = [0, 0], sizes = [1, 8], strides = [1, 1]} : vector<2x8xf32> to vector<1x8xf32>
    %5 = vector.broadcast %3 : vector<128x1xf32> to vector<128x8xf32>
    %6 = vector.broadcast %4 : vector<1x8xf32> to vector<128x8xf32>
    %7 = arith.mulf %5, %6 : vector<128x8xf32>
    %8 = vector.broadcast %2 : vector<128x1xf32> to vector<128x8xf32>
    %9 = arith.addf %8, %7 : vector<128x8xf32>
    %10 = vector.extract_strided_slice %1 {offsets = [0, 1], sizes = [128, 1], strides = [1, 1]} : vector<128x2xf32> to vector<128x1xf32>
    %11 = vector.extract_strided_slice %0 {offsets = [1, 0], sizes = [1, 8], strides = [1, 1]} : vector<2x8xf32> to vector<1x8xf32>
    %12 = vector.broadcast %10 : vector<128x1xf32> to vector<128x8xf32>
    %13 = vector.broadcast %11 : vector<1x8xf32> to vector<128x8xf32>
    %14 = arith.mulf %12, %13 : vector<128x8xf32>
    %15 = arith.addf %9, %14 : vector<128x8xf32>
    %cst = arith.constant 0.000000e+00 : f32
    %16 = vector.broadcast %cst : f32 to vector<128x8xf32>
    %17 = arith.maximumf %15, %16 : vector<128x8xf32>
    %c0_5 = arith.constant 0 : index
    %c0_6 = arith.constant 0 : index
    %18 = vector.load %arg4[%c0_5, %c0_6] : memref<2x128xf32, #tpu.memory_space<vmem>>, vector<2x128xf32>
    %cst_7 = arith.constant dense<0.000000e+00> : vector<2x8xf32>
    %19 = tpu.matmul %18, %17, %cst_7 {dimension_numbers = #tpu.dot_dimension_numbers<[1], [0], [0], [1], [0, 0, 1, 1], [], []>} : vector<2x128xf32>, vector<128x8xf32>, vector<2x8xf32> -> vector<2x8xf32>
    %c0_8 = arith.constant 0 : index
    %c0_9 = arith.constant 0 : index
    %20 = vector.load %arg5[%c0_8, %c0_9] : memref<2x1xf32, #tpu.memory_space<vmem>>, vector<2x1xf32>
    %21 = vector.broadcast %20 : vector<2x1xf32> to vector<2x8xf32>
    %22 = arith.addf %19, %21 : vector<2x8xf32>
    %c0_10 = arith.constant 0 : index
    %c0_11 = arith.constant 0 : index
    %23 = vector.load %arg6[%c0_10, %c0_11] : memref<2x8xf32, #tpu.memory_space<vmem>>, vector<2x8xf32>
    tpu.vector_store %arg6[%c0_10, %c0_11], %22 {strides = array<i32>} : memref<2x8xf32, #tpu.memory_space<vmem>>, vector<2x8xf32>,
    return
  }
  func.func @transform_0(%arg0: i32) -> (i32, i32) {
    %c0_i32 = arith.constant 0 : i32
    %c0_i32_0 = arith.constant 0 : i32
    return %c0_i32, %arg0 : i32, i32
  }
  func.func @transform_1(%arg0: i32) -> (i32, i32) {
    %c0_i32 = arith.constant 0 : i32
    %c0_i32_0 = arith.constant 0 : i32
    %c0_i32_1 = arith.constant 0 : i32
    return %c0_i32, %c0_i32_0 : i32, i32
  }
  func.func @transform_2(%arg0: i32) -> (i32, i32) {
    %c0_i32 = arith.constant 0 : i32
    %c0_i32_0 = arith.constant 0 : i32
    %c0_i32_1 = arith.constant 0 : i32
    return %c0_i32, %c0_i32_0 : i32, i32
  }
  func.func @transform_3(%arg0: i32) -> (i32, i32) {
    %c0_i32 = arith.constant 0 : i32
    %c0_i32_0 = arith.constant 0 : i32
    %c0_i32_1 = arith.constant 0 : i32
    return %c0_i32, %c0_i32_0 : i32, i32
  }
  func.func @transform_4(%arg0: i32) -> (i32, i32) {
    %c0_i32 = arith.constant 0 : i32
    %c0_i32_0 = arith.constant 0 : i32
    %c0_i32_1 = arith.constant 0 : i32
    return %c0_i32, %c0_i32_0 : i32, i32
  }
  func.func @transform_5(%arg0: i32) -> (i32, i32) {
    %c0_i32 = arith.constant 0 : i32
    %c0_i32_0 = arith.constant 0 : i32
    return %c0_i32, %arg0 : i32, i32
  }
}

</mosaic_0001>

<bundles_post_ra>
// kernel: tpu_custom_call.1
= control target key start
LH: loop header
LB: loop body
LE: loop exit
PB: predicated region body
PF: predicated region fallthrough
CT: control target
= control target key end

     0   :  { %v454_v3 = vmov 0   ;;  %s702_s0 = inlined_call_operand.vmem [shape: f32[2,8], index: 0, kind: input, shape index: {}]   ;;  %s703_s1 = inlined_call_operand.vmem [shape: f32[128,2], index: 1, kind: input, shape index: {}]   ;;  %s704_s2 = inlined_call_operand.vmem [shape: f32[128,1], index: 2, kind: input, shape index: {}]   ;;  %s705_s3 = inlined_call_operand.vmem [shape: f32[2,128], index: 3, kind: input, shape index: {}]   ;;  %s706_s4 = inlined_call_operand.vmem [shape: f32[2,1], index: 4, kind: input, shape index: {}]   ;;  %s707_s5 = inlined_call_operand.hbm [shape: f32[2,8], index: 5, kind: output, shape index: {}]  }
   0x1   :  { %v490_v0 = vld [vmem:[%s703_s1 + $0x20] sm:$0xff]  ;;  %v495_v1 = vld [vmem:[%s703_s1 + $0x10] sm:$0xff]  ;;  %410 = vset.pattern.permute.xlu2 %v454_v3  ;;  %409 = vset.pattern.permute.xlu1 %v454_v3 }
   0x2   :  { %v500_v2 = vld [vmem:[%s703_s1] sm:$0xff]  ;;  %408 = vset.pattern.permute.xlu0 %v454_v3  ;;  %76 = vperm.xlu2 %410, %v490_v0  }
   0x3   :  { %66 = vperm.xlu1 %409, %v495_v1   ;;  %56 = vperm.xlu0 %408, %v500_v2  }
   0x4   :  { %10 = vsyncpa [#allocation3], 0  ;;  %v511_v4 = vld [vmem:[%s703_s1 + $0x28] sm:$0xff]  ;;  %v25_v5 = vld [vmem:[%s703_s1 + $0x18] sm:$0xff]  ;;  %v455_v18 = vmov 1   ;;  %s456_s8 = smov [#allocation2]  }
   0x5   :  { %v519_v6 = vld [vmem:[%s703_s1 + $0x8] sm:$0xff]  ;;  %v30_v7 = vld [vmem:[%s703_s1 + $0x40] sm:$0xff]  ;;  %v29_v8 = vld [vmem:[%s703_s1 + $0x38] sm:$0xff]  ;;  %s394_s9 = sshll.u32 %s456_s8, 4  ;;  %s396_s12 = sshll.u32 %s707_s5, 4  ;;  %vm387_vm0 = vcmask 58368   ;;  %s395_s9 = int_to_ptr.vmem [resolvable:$true] %s394_s9  ;;  %s397_s12 = int_to_ptr.hbm [resolvable:$true] %s396_s12 }
   0x6   :  { %v532_v9 = vld [vmem:[%s703_s1 + $0x30] sm:$0xff]  ;;  %v33_v10 = vld [vmem:[%s703_s1 + $0x58] sm:$0xff]  ;;  %v31_v12 = vld [vmem:[%s703_s1 + $0x48] sm:$0xff] }
   0x7   :  { %v32_v11 = vld [vmem:[%s703_s1 + $0x50] sm:$0xff]  ;;  %v35_v14 = vld [vmem:[%s703_s1 + $0x68] sm:$0xff]  ;;  %v34_v15 = vld [vmem:[%s703_s1 + $0x60] sm:$0xff] }
   0x8   :  { %v36_v13 = vld [vmem:[%s703_s1 + $0x70] sm:$0xff]  ;;  %v53_v16 = vld [vmem:[%s704_s2 + $0x78] sm:$0xff]  ;;  %v51_v20 = vld [vmem:[%s704_s2 + $0x68] sm:$0xff] }
   0x9   :  { %v37_v17 = vld [vmem:[%s703_s1 + $0x78] sm:$0xff]  ;;  %v52_v19 = vld [vmem:[%s704_s2 + $0x70] sm:$0xff]  ;;  %v50_v22 = vld [vmem:[%s704_s2 + $0x60] sm:$0xff] }
   0xa   :  { %81 = vperm.xlu2 %410, %v511_v4   ;;  %v48_v21 = vld [vmem:[%s704_s2 + $0x50] sm:$0xff]  ;;  %v43_v23 = vld [vmem:[%s704_s2 + $0x28] sm:$0xff]  ;;  %v49_v24 = vld [vmem:[%s704_s2 + $0x58] sm:$0xff] }
   0xb   :  { %71 = vperm.xlu1 %409, %v25_v5   ;;  %61 = vperm.xlu0 %408, %v519_v6   ;;  %v47_v25 = vld [vmem:[%s704_s2 + $0x48] sm:$0xff]  ;;  %v46_v26 = vld [vmem:[%s704_s2 + $0x40] sm:$0xff]  ;;  %v45_v28 = vld [vmem:[%s704_s2 + $0x38] sm:$0xff] }
   0xc   :  { %v38_v29 = vld [vmem:[%s704_s2] sm:$0xff]  ;;  %v44_v30 = vld [vmem:[%s704_s2 + $0x30] sm:$0xff]  ;;  %v41_v36 = vld [vmem:[%s704_s2 + $0x18] sm:$0xff] }
   0xd   :  { %v42_v32 = vld [vmem:[%s704_s2 + $0x20] sm:$0xff]  ;;  %v40_v40 = vld [vmem:[%s704_s2 + $0x10] sm:$0xff]  ;;  %v39_v44 = vld [vmem:[%s704_s2 + $0x8] sm:$0xff] }
   0xe   :  { %v21_v51 = vld [vmem:[%s702_s0] sm:$0x3] }
   0xf   :  { %v648_v52 = vperm.slane %v21_v51, 1  ;;  %v650_v53 = vperm.slane %v21_v51, 0 }
  0x12   :  { %96 = vperm.xlu2 %410, %v30_v7  }
  0x13   :  { %91 = vperm.xlu1 %409, %v29_v8   ;;  %86 = vperm.xlu0 %408, %v532_v9  }
  0x1a   :  { %111 = vperm.xlu2 %410, %v33_v10  }
  0x1b   :  { %106 = vperm.xlu1 %409, %v32_v11   ;;  %101 = vperm.xlu0 %408, %v31_v12  }
  0x22   :  { %126 = vperm.xlu2 %410, %v36_v13  }
  0x23   :  { %121 = vperm.xlu1 %409, %v35_v14   ;;  %116 = vperm.xlu0 %408, %v34_v15  }
  0x2a   :  { %411 = vset.pattern.permute.xlu2 %v455_v18 }
  0x2b   :  { %228 = vperm.xlu1 %409, %v53_v16   ;;  %131 = vperm.xlu0 %408, %v37_v17  }
  0x2c   :  { %308 = vperm.xlu2 %411, %v37_v17  }
  0x33   :  { %412 = vset.pattern.permute.xlu1 %v455_v18  ;;  %223 = vperm.xlu0 %408, %v52_v19  }
  0x34   :  { %413 = vset.pattern.permute.xlu2 %v454_v3  ;;  %304 = vperm.xlu1 %412, %v36_v13  }
  0x35   :  { %218 = vperm.xlu2 %413, %v51_v20  }
  0x3b   :  { %203 = vperm.xlu0 %408, %v48_v21  }
  0x3c   :  { %414 = vset.pattern.permute.xlu1 %v454_v3 }
  0x3d   :  { %415 = vset.pattern.permute.xlu2 %v455_v18  ;;  %213 = vperm.xlu1 %414, %v50_v22  }
  0x3e   :  { %296 = vperm.xlu2 %415, %v34_v15  }
  0x43   :  { %178 = vperm.xlu0 %408, %v43_v23  }
  0x45   :  { %208 = vperm.xlu1 %414, %v49_v24  }
  0x46   :  { %292 = vperm.xlu2 %415, %v33_v10  }
  0x4b   :  { %420 = vset.pattern.permute.xlu0 %v455_v18 }
  0x4c   :  { %300 = vperm.xlu0 %420, %v35_v14  }
  0x4d   :  { %416 = vset.pattern.permute.xlu1 %v455_v18 }
  0x4e   :  { %417 = vset.pattern.permute.xlu2 %v454_v3  ;;  %288 = vperm.xlu1 %416, %v32_v11  }
  0x4f   :  { %198 = vperm.xlu2 %417, %v47_v25  }
  0x54   :  { %280 = vperm.xlu0 %420, %v30_v7  }
  0x56   :  { %284 = vperm.xlu1 %416, %v31_v12  }
  0x57   :  { %193 = vperm.xlu2 %417, %v46_v26  }
  0x5c   :  { %260 = vperm.xlu0 %420, %v25_v5   ;;  %v591_v27 = vpop.permute.xlu2 %76 }
  0x5e   :  { %418 = vset.pattern.permute.xlu1 %v454_v3 }
  0x5f   :  { %419 = vset.pattern.permute.xlu2 %v455_v18  ;;  %188 = vperm.xlu1 %418, %v45_v28  }
  0x60   :  { %276 = vperm.xlu2 %419, %v29_v8  }
  0x64   :  { %425 = vset.pattern.permute.xlu0 %v454_v3  ;;  %v605_v31 = vpop.permute.xlu2 %81 }
  0x65   :  { %153 = vperm.xlu0 %425, %v38_v29  }
  0x67   :  { %183 = vperm.xlu1 %418, %v44_v30  }
  0x68   :  { %272 = vperm.xlu2 %419, %v532_v9  }
  0x6c   :  { %v612_v33 = vpop.permute.xlu2 %96 }
  0x6f   :  { %421 = vset.pattern.permute.xlu1 %v455_v18 }
  0x70   :  { %422 = vset.pattern.permute.xlu2 %v454_v3  ;;  %268 = vperm.xlu1 %421, %v511_v4  }
  0x71   :  { %173 = vperm.xlu2 %422, %v42_v32  }
  0x74   :  { %v112_v37 = vpop.permute.xlu2 %111 }
  0x75   :  { %v616_v34 = vpop.permute.xlu1 %66  ;;  %v618_v35 = vpop.permute.xlu0 %56  ;;  %v146_v13 = vmul.f32 %v650_v53, %v112_v37 }
  0x78   :  { %264 = vperm.xlu1 %421, %v490_v0  }
  0x79   :  { %168 = vperm.xlu2 %422, %v41_v36  }
  0x7c   :  { %v127_v41 = vpop.permute.xlu2 %126 }
  0x7d   :  { %v624_v38 = vpop.permute.xlu1 %71  ;;  %v626_v39 = vpop.permute.xlu0 %61  ;;  %v149_v61 = vmul.f32 %v650_v53, %v127_v41 }
  0x80   :  { %423 = vset.pattern.permute.xlu1 %v454_v3 }
  0x81   :  { %163 = vperm.xlu1 %423, %v40_v40   ;;  %424 = vset.pattern.permute.xlu2 %v455_v18  ;;  %v143_v40 = vmul.f32 %v650_v53, %v612_v33 }
  0x82   :  { %256 = vperm.xlu2 %424, %v495_v1  }
  0x85   :  { %v634_v42 = vpop.permute.xlu1 %91  ;;  %v636_v43 = vpop.permute.xlu0 %86 }
  0x86   :  { %v309_v45 = vpop.permute.xlu2 %308 }
  0x87   :  { %v327_v56 = vmul.f32 %v648_v52, %v309_v45 }
  0x89   :  { %158 = vperm.xlu1 %423, %v39_v44  }
  0x8a   :  { %252 = vperm.xlu2 %424, %v519_v6  }
  0x8d   :  { %v107_v46 = vpop.permute.xlu1 %106  ;;  %v102_v47 = vpop.permute.xlu0 %101 }
  0x8e   :  { %v145_v23 = vmul.f32 %v650_v53, %v107_v46  ;;  %v144_v41 = vmul.f32 %v650_v53, %v102_v47  ;;  %v142_v47 = vmul.f32 %v650_v53, %v634_v42  ;;  %v140_v42 = vmul.f32 %v650_v53, %v605_v31 }
  0x8f   :  { %v219_v50 = vpop.permute.xlu2 %218 }
  0x91   :  { %426 = vset.pattern.permute.xlu1 %v455_v18 }
  0x92   :  { %248 = vperm.xlu1 %426, %v500_v2   ;;  %427 = vset.pattern.permute.xlu2 %v454_v3 }
  0x95   :  { %v122_v48 = vpop.permute.xlu1 %121  ;;  %v117_v49 = vpop.permute.xlu0 %116 }
  0x96   :  { %v148_v11 = vmul.f32 %v650_v53, %v122_v48  ;;  %v147_v12 = vmul.f32 %v650_v53, %v117_v49 }
  0x98   :  { %v297_v59 = vpop.permute.xlu2 %296  ;;  %v244_v17 = vadd.f32 %v219_v50, %v148_v11 }
  0x99   :  { %v324_v14 = vmul.f32 %v648_v52, %v297_v59 }
  0x9d   :  { %v229_v54 = vpop.permute.xlu1 %228  ;;  %v132_v55 = vpop.permute.xlu0 %131 }
  0x9e   :  { %v150_v57 = vmul.f32 %v650_v53, %v132_v55 }
  0xa0   :  { %v246_v58 = vadd.f32 %v229_v54, %v150_v57  ;;  %v293_v4 = vpop.permute.xlu2 %292 }
  0xa1   :  { %v323_v18 = vmul.f32 %v648_v52, %v293_v4 }
  0xa2   :  { %v343_v60 = vadd.f32 %v327_v56, %v246_v58 }
  0xa4   :  { %v359_v62 = vmax.f32 %v343_v60, 0.0 }
  0xa5   :  { %v224_v63 = vpop.permute.xlu0 %223 }
  0xa6   :  { %v245_v0 = vadd.f32 %v224_v63, %v149_v61  ;;  %v305_v1 = vpop.permute.xlu1 %304  ;;  %367 = vmatpush.msra.mxu0 %v359_v62 }
  0xa7   :  { %v326_v2 = vmul.f32 %v648_v52, %v305_v1 }
  0xa9   :  { %v342_v3 = vadd.f32 %v326_v2, %v245_v0  ;;  %v199_v8 = vpop.permute.xlu2 %198  ;;  %v141_v0 = vmul.f32 %v650_v53, %v636_v43  ;;  %v138_v43 = vmul.f32 %v650_v53, %v624_v38 }
  0xaa   :  { %v240_v49 = vadd.f32 %v199_v8, %v144_v41 }
  0xab   :  { %v358_v5 = vmax.f32 %v342_v3, 0.0 }
  0xad   :  { %v204_v6 = vpop.permute.xlu0 %203  ;;  %368 = vmatpush.msra.mxu0 %v358_v5 }
  0xae   :  { %v241_v28 = vadd.f32 %v204_v6, %v145_v23 }
  0xaf   :  { %v214_v7 = vpop.permute.xlu1 %213 }
  0xb0   :  { %v243_v15 = vadd.f32 %v214_v7, %v147_v12 }
  0xb1   :  { %v194_v19 = vpop.permute.xlu2 %193 }
  0xb2   :  { %v340_v26 = vadd.f32 %v324_v14, %v243_v15  ;;  %v239_v50 = vadd.f32 %v194_v19, %v143_v40  ;;  %v139_v15 = vmul.f32 %v650_v53, %v591_v27  ;;  %v361_v19 = vld [vmem:[%s706_s4] sm:$0x3]  ;;  %v137_v27 = vmul.f32 %v650_v53, %v616_v34 }
  0xb3   :  { %364 = vperm.xlu2 %427, %v361_v19   ;;  %v135_v34 = vmul.f32 %v650_v53, %v618_v35 }
  0xb4   :  { %v356_v32 = vmax.f32 %v340_v26, 0.0 }
  0xb5   :  { %v179_v9 = vpop.permute.xlu0 %178 }
  0xb6   :  { %v236_v8 = vadd.f32 %v179_v9, %v140_v42 }
  0xb7   :  { %v209_v10 = vpop.permute.xlu1 %208 }
  0xb8   :  { %v242_v20 = vadd.f32 %v209_v10, %v146_v13 }
  0xba   :  { %v339_v30 = vadd.f32 %v323_v18, %v242_v20  ;;  %v277_v44 = vpop.permute.xlu2 %276 }
  0xbb   :  { %v319_v58 = vmul.f32 %v648_v52, %v277_v44 }
  0xbc   :  { %v355_v46 = vmax.f32 %v339_v30, 0.0 }
  0xbe   :  { %v301_v16 = vpop.permute.xlu0 %300 }
  0xbf   :  { %v325_v21 = vmul.f32 %v648_v52, %v301_v16 }
  0xc0   :  { %v289_v22 = vpop.permute.xlu1 %288 }
  0xc1   :  { %v322_v24 = vmul.f32 %v648_v52, %v289_v22  ;;  %v341_v25 = vadd.f32 %v325_v21, %v244_v17 }
  0xc2   :  { %v273_v59 = vpop.permute.xlu2 %272 }
  0xc3   :  { %v357_v29 = vmax.f32 %v341_v25, 0.0  ;;  %v338_v36 = vadd.f32 %v322_v24, %v241_v28  ;;  %v318_v1 = vmul.f32 %v648_v52, %v273_v59 }
  0xc5   :  { %369 = vmatpush.msra.mxu0 %v357_v29  ;;  %v354_v54 = vmax.f32 %v338_v36, 0.0 }
  0xc6   :  { %v281_v37 = vpop.permute.xlu0 %280 }
  0xc7   :  { %v320_v45 = vmul.f32 %v648_v52, %v281_v37  ;;  %370 = vmatpush.msra.mxu0 %v356_v32  ;;  %v136_v32 = vmul.f32 %v650_v53, %v626_v39  ;;  %v360_v39 = vld [vmem:[%s705_s3] sm:$0x3] }
  0xc8   :  { %v285_v48 = vpop.permute.xlu1 %284 }
  0xc9   :  { %v321_v51 = vmul.f32 %v648_v52, %v285_v48  ;;  %371 = vmatpush.msra.mxu0 %v355_v46  ;;  %v336_v56 = vadd.f32 %v320_v45, %v239_v50 }
  0xcb   :  { %372 = vmatpush.msra.mxu0 %v354_v54  ;;  %v337_v55 = vadd.f32 %v321_v51, %v240_v49  ;;  %v352_v33 = vmax.f32 %v336_v56, 0.0  ;;  %v174_v4 = vpop.permute.xlu2 %173 }
  0xcc   :  { %v235_v31 = vadd.f32 %v174_v4, %v139_v15 }
  0xcd   :  { %v353_v57 = vmax.f32 %v337_v55, 0.0 }
  0xce   :  { %v261_v14 = vpop.permute.xlu0 %260 }
  0xcf   :  { %373 = vmatpush.msra.mxu0 %v353_v57  ;;  %v315_v16 = vmul.f32 %v648_v52, %v261_v14 }
  0xd1   :  { %v189_v60 = vpop.permute.xlu1 %188  ;;  %374 = vmatpush.msra.mxu0 %v352_v33 }
  0xd2   :  { %v238_v61 = vadd.f32 %v189_v60, %v142_v47 }
  0xd3   :  { %v169_v11 = vpop.permute.xlu2 %168 }
  0xd4   :  { %v335_v62 = vadd.f32 %v319_v58, %v238_v61  ;;  %v234_v17 = vadd.f32 %v169_v11, %v138_v43 }
  0xd6   :  { %v351_v63 = vmax.f32 %v335_v62, 0.0  ;;  %v331_v38 = vadd.f32 %v315_v16, %v234_v17 }
  0xd7   :  { %v154_v45 = vpop.permute.xlu0 %153 }
  0xd8   :  { %375 = vmatpush.msra.mxu0 %v351_v63  ;;  %v347_v23 = vmax.f32 %v331_v38, 0.0  ;;  %v231_v48 = vadd.f32 %v154_v45, %v135_v34 }
  0xd9   :  { %v184_v2 = vpop.permute.xlu1 %183 }
  0xda   :  { %v237_v3 = vadd.f32 %v184_v2, %v141_v0 }
  0xdc   :  { %v334_v5 = vadd.f32 %v318_v1, %v237_v3  ;;  %v257_v21 = vpop.permute.xlu2 %256 }
  0xdd   :  { %v314_v24 = vmul.f32 %v648_v52, %v257_v21 }
  0xde   :  { %v350_v6 = vmax.f32 %v334_v5, 0.0 }
  0xe0   :  { %376 = vmatpush.msra.mxu0 %v350_v6 }
  0xe2   :  { %v269_v7 = vpop.permute.xlu1 %268 }
  0xe3   :  { %v317_v10 = vmul.f32 %v648_v52, %v269_v7 }
  0xe4   :  { %v253_v29 = vpop.permute.xlu2 %252 }
  0xe5   :  { %v333_v12 = vadd.f32 %v317_v10, %v236_v8  ;;  %v313_v36 = vmul.f32 %v648_v52, %v253_v29 }
  0xe7   :  { %v349_v13 = vmax.f32 %v333_v12, 0.0 }
  0xe9   :  { %377 = vmatpush.msra.mxu0 %v349_v13 }
  0xea   :  { %v265_v18 = vpop.permute.xlu1 %264 }
  0xeb   :  { %v316_v9 = vmul.f32 %v648_v52, %v265_v18 }
  0xed   :  { %v332_v20 = vadd.f32 %v316_v9, %v235_v31 }
  0xef   :  { %v348_v22 = vmax.f32 %v332_v20, 0.0 }
  0xf1   :  { %378 = vmatpush.msra.mxu0 %v348_v22 }
  0xf3   :  { %v164_v25 = vpop.permute.xlu1 %163  ;;  %379 = vmatpush.msra.mxu0 %v347_v23 }
  0xf4   :  { %v233_v26 = vadd.f32 %v164_v25, %v137_v27 }
  0xf6   :  { %v330_v28 = vadd.f32 %v314_v24, %v233_v26 }
  0xf8   :  { %v346_v30 = vmax.f32 %v330_v28, 0.0 }
  0xfa   :  { %380 = vmatpush.msra.mxu0 %v346_v30 }
  0xfb   :  { %v159_v37 = vpop.permute.xlu1 %158 }
  0xfc   :  { %v232_v40 = vadd.f32 %v159_v37, %v136_v32 }
  0xfe   :  { %v329_v41 = vadd.f32 %v313_v36, %v232_v40 }
 0x100   :  { %v345_v44 = vmax.f32 %v329_v41, 0.0 }
 0x102   :  { %381 = vmatpush.msra.mxu0 %v345_v44 }
 0x104   :  { %v249_v46 = vpop.permute.xlu1 %248 }
 0x105   :  { %v312_v49 = vmul.f32 %v648_v52, %v249_v46 }
 0x107   :  { %v328_v50 = vadd.f32 %v312_v49, %v231_v48 }
 0x109   :  { %v344_v51 = vmax.f32 %v328_v50, 0.0 }
 0x10b   :  { %382 = vmatpush.msra.mxu0 %v344_v51 }
 0x10c   :  { %383 = vmatmul.f32.vlgmr.msra.gmra.mxu0 %v360_v39 }
 0x10d   :  { %v365_v54 = vpop.permute.xlu2 %364 }
 0x189   :  { %v384_v35 = vpop.f32.mrf.mxu0 }
 0x18a   :  { %v385_v53 = vadd.f32 %v384_v35, %v365_v54 }
 0x18c   :  { %388 = vst.msk [vmem:[#allocation2] sm:$0x3] %vm387_vm0, %v385_v53 }
 0x18d   :  { %399 = dma.vmem_to_hbm [thread:$0]  %s395_s9, 32, %s397_s12, [#allocation3]  }
 0x18e   :  { %452 = dma.done.wait [#allocation3], 32  }
 0x18f   :  { %453 = vsyncadd [#allocation3], 4294967264 }
 0x190   :  { %404 = vsyncpa [#allocation3], 1 }

</bundles_post_ra>
